<compile_context>
chip_gen: v6e
topology: v6e:2x2x1
jax: 0.10.0
libtpu: 0.0.40
codegen_flags: <defaults>
</compile_context>

<pallas_src>
import math

import jax
import jax.numpy as jnp
from jax.experimental import pallas as pl
from jax.experimental.pallas import tpu as pltpu


LEAKY_SLOPE = 0.01  # torch.nn.LeakyReLU default negative_slope

_N_PARAMS = {"gcn": 2, "graphsage": 3, "bi-interaction": 4}


def _leaky_relu(x):
    return jnp.where(x >= 0, x, LEAKY_SLOPE * x)


def _round_up(x, m):
    return ((x + m - 1) // m) * m


def _tpu_vmem_info():
    """Returns (physical VMEM bytes per TensorCore, is_v7x). Conservative fallbacks."""
    phys = None
    is_v7 = False
    try:
        phys = int(pltpu.get_tpu_info().vmem_capacity_bytes)
    except Exception:
        phys = None
    try:
        kind = jax.devices()[0].device_kind.lower()
        is_v7 = "v7" in kind
        if phys is None:
            phys = (64 << 20) if is_v7 else (128 << 20)
    except Exception:
        pass
    if phys is None:
        phys = 64 << 20  # conservative: valid on every generation
    return phys, is_v7


def _plan_tiles(n, tm, tk, min_itemsize):
    """Pick tile sizes / padded extents for an (n, n) A matrix."""
    assert tk % 128 == 0 and tm % 8 == 0, (tm, tk)
    sub = 16 if min_itemsize == 2 else 8
    # Columns: never pad past round_up(n, 128); padded A columns are pure HBM waste.
    tk = max(128, min(tk, _round_up(n, 128)))
    # Rows: keep >= 2 i-strips so the "parallel" axis can split across 2 TCs (v7x).
    while tm > 64 and (n + tm - 1) // tm < 2:
        tm //= 2
    tm = max(sub, (tm // sub) * sub)
    n_pad_m = _round_up(n, tm)
    n_pad_k = _round_up(n, tk)
    return tm, tk, n_pad_m, n_pad_k


# ----------------------------- kernel factory --------------------------------

def _make_kernel(agg_type, *, resident_e, tm, tk):
    n_params = _N_PARAMS[agg_type]

    def _epilogue(ego, side, p_refs):
        if agg_type == "gcn":
            w, b = p_refs
            return _leaky_relu(
                jnp.dot(ego + side, w[...], preferred_element_type=jnp.float32)
                + b[...])
        if agg_type == "graphsage":
            # cat([ego, side], 1) @ W^T == ego @ W_ego + side @ W_side
            w_ego, w_side, b = p_refs
            return _leaky_relu(
                jnp.dot(ego, w_ego[...], preferred_element_type=jnp.float32)
                + jnp.dot(side, w_side[...], preferred_element_type=jnp.float32)
                + b[...])
        # bi-interaction
        w1, b1, w2, b2 = p_refs
        s = _leaky_relu(
            jnp.dot(ego + side, w1[...], preferred_element_type=jnp.float32)
            + b1[...])
        bi = _leaky_relu(
            jnp.dot(ego * side, w2[...], preferred_element_type=jnp.float32)
            + b2[...])
        return s + bi

    def kernel(*refs):
        if resident_e:
            # refs = (E_full, A_tile, *params, out_tile, side_acc)
            e_ref, a_ref = refs[0], refs[1]
            p_refs = refs[2:2 + n_params]
            o_ref, side_acc = refs[2 + n_params], refs[3 + n_params]
            i = pl.program_id(0)
            k = pl.program_id(1)
            rhs = e_ref[pl.ds(pl.multiple_of(k * tk, tk), tk), :]
            load_ego = lambda: e_ref[pl.ds(pl.multiple_of(i * tm, tm), tm), :]
        else:
            # refs = (E_k_tile, ego_i_tile, A_tile, *params, out_tile, side_acc)
            e_ref, ego_ref, a_ref = refs[0], refs[1], refs[2]
            p_refs = refs[3:3 + n_params]
            o_ref, side_acc = refs[3 + n_params], refs[4 + n_params]
            k = pl.program_id(1)
            rhs = e_ref[...]
            load_ego = lambda: ego_ref[...]

        @pl.when(k == 0)
        def _():
            side_acc[...] = jnp.zeros_like(side_acc)

        # side[i_tile, :] += A[i_tile, k_tile] @ E[k_tile, :]
        # A / E fed in their storage dtype (bf16 default): native MXU bf16 x bf16
        # with f32 accumulation; no in-kernel upcast temporaries.
        side_acc[...] += jnp.dot(a_ref[...], rhs,
                                 preferred_element_type=jnp.float32)

        @pl.when(k == pl.num_programs(1) - 1)
        def _():
            ego = load_ego().astype(jnp.float32)   # small (tm, in_dim) cast only
            out = _epilogue(ego, side_acc[...], p_refs)
            o_ref[...] = out.astype(o_ref.dtype)

    return kernel


# ----------------------------- input preparation ------------------------------

def prepare_aggregator_inputs(ego, a_in, *, tm=None, tk=None,
                              a_dtype=jnp.bfloat16, e_dtype=jnp.bfloat16):
    """Pad + cast ego / A_in ONCE (hoisted out of the per-layer forward call).

    Reuse the returned dict across KGAT layers / training steps so the pad and
    bf16 cast of the dense A (roughly 3x the kernel's own A traffic) is not paid
    on every forward.
    """
    n, in_dim = ego.shape
    assert a_in.shape == (n, n)
    _, is_v7 = _tpu_vmem_info()
    if tm is None:
        tm = 512
    if tk is None:
        tk = 2048 if is_v7 else 1024   # ~2 MiB A tile keeps v7x's faster HBM saturated

    a_store = jnp.dtype(a_dtype) if a_dtype is not None else jnp.dtype(a_in.dtype)
    e_store = jnp.dtype(e_dtype) if e_dtype is not None else jnp.dtype(ego.dtype)
    min_item = min(a_store.itemsize, e_store.itemsize)

    tm, tk, n_pad_m, n_pad_k = _plan_tiles(n, tm, tk, min_item)
    n_e = max(n_pad_m, n_pad_k)   # E serves both the k-dim RHS and the epilogue i-tile

    ego_p = jnp.pad(ego, ((0, n_e - n), (0, 0))) if n_e > n else ego
    if ego_p.dtype != e_store:
        ego_p = ego_p.astype(e_store)

    a_p = a_in
    if n_pad_m > n or n_pad_k > n:
        a_p = jnp.pad(a_p, ((0, n_pad_m - n), (0, n_pad_k - n)))
    if a_p.dtype != a_store:
        a_p = a_p.astype(a_store)

    return dict(ego_p=ego_p, a_p=a_p, n=n, in_dim=in_dim, tm=tm, tk=tk,
                n_pad_m=n_pad_m, n_pad_k=n_pad_k, n_e=n_e,
                out_dtype=jnp.dtype(ego.dtype))


# ----------------------------- wrapper ----------------------------------------

def aggregator_forward(ego, a_in, params, aggregator_type, *,
                       prepared=None, tm=None, tk=None,
                       a_dtype=jnp.bfloat16, e_dtype=jnp.bfloat16,
                       resident_e_max_bytes=None, force_stream_e=False):
    """KGAT Aggregator forward.

    ego:    (N, in_dim) float32 node embeddings (ignored if `prepared` given).
    a_in:   (N, N) dense Laplacian (torch.sparse A_in materialized dense).
    params: per-aggregator-type weights, pre-transposed to (in, out) layout;
            biases as (1, out).
    Note: bf16 storage of A/E is an intentional ~0.4% precision trade; pass
    a_dtype=None / e_dtype=None for full f32.
    """
    if aggregator_type not in _N_PARAMS:
        raise NotImplementedError(aggregator_type)
    extra = tuple(params)
    assert len(extra) == _N_PARAMS[aggregator_type]
    out_dim = extra[0].shape[1]

    if prepared is None:
        prepared = prepare_aggregator_inputs(ego, a_in, tm=tm, tk=tk,
                                             a_dtype=a_dtype, e_dtype=e_dtype)
    p = prepared
    ego_p, a_p = p["ego_p"], p["a_p"]
    n, in_dim = p["n"], p["in_dim"]
    tm, tk = p["tm"], p["tk"]
    n_pad_m, n_pad_k, n_e = p["n_pad_m"], p["n_pad_k"], p["n_e"]
    out_dtype = p["out_dtype"]

    grid = (n_pad_m // tm, n_pad_k // tk)

    # --- generation-aware VMEM budget (never request above physical VMEM) ----
    phys, _ = _tpu_vmem_info()
    vmem_cap = max(32 << 20, phys - (8 << 20))

    a_item = a_p.dtype.itemsize
    e_item = ego_p.dtype.itemsize
    a_tile_b = tm * tk * a_item
    out_tile_b = tm * out_dim * jnp.dtype(out_dtype).itemsize
    param_b = sum(int(x.size) * x.dtype.itemsize for x in extra)
    scratch_b = tm * in_dim * 4
    e_bytes = n_e * in_dim * e_item

    # Resident-E decision: E (constant index_map) is DMA'd once but still
    # double-buffer allocated by the pipeliner -> account 2x against the budget.
    fixed_b = 2 * a_tile_b + 2 * out_tile_b + scratch_b + 2 * param_b
    e_budget = vmem_cap - fixed_b - (8 << 20)
    if resident_e_max_bytes is not None:
        e_budget = min(e_budget, resident_e_max_bytes)
    resident_e = (not force_stream_e) and (2 * e_bytes <= e_budget)

    def const_spec(arr):
        return pl.BlockSpec(arr.shape, lambda i, k: (0,) * arr.ndim)

    a_spec = pl.BlockSpec((tm, tk), lambda i, k: (i, k))
    out_spec = pl.BlockSpec((tm, out_dim), lambda i, k: (i, 0))

    if resident_e:
        # Whole E resident in VMEM (constant index_map -> single HBM pass);
        # the epilogue ego tile is sliced from the same buffer (no second pass).
        e_spec = pl.BlockSpec((n_e, in_dim), lambda i, k: (0, 0))
        in_specs = [e_spec, a_spec] + [const_spec(x) for x in extra]
        inputs = (ego_p, a_p) + extra
        e_buf_b = 2 * e_bytes
    else:
        # Fallback: stream E per k-tile; epilogue ego per i-strip.
        e_spec = pl.BlockSpec((tk, in_dim), lambda i, k: (k, 0))
        ego_spec = pl.BlockSpec((tm, in_dim), lambda i, k: (i, 0))
        in_specs = [e_spec, ego_spec, a_spec] + [const_spec(x) for x in extra]
        inputs = (ego_p, ego_p, a_p) + extra
        e_buf_b = 2 * (tk + tm) * in_dim * e_item

    vmem_needed = fixed_b + e_buf_b
    vmem_limit = int(min(max(vmem_needed * 3 // 2 + (4 << 20), 32 << 20), vmem_cap))

    kernel = _make_kernel(aggregator_type, resident_e=resident_e, tm=tm, tk=tk)

    n_epi = 2 if aggregator_type in ("bi-interaction", "graphsage") else 1
    cost = pl.CostEstimate(
        flops=2 * n_pad_m * n_pad_k * in_dim
              + 2 * n_pad_m * in_dim * out_dim * n_epi,
        transcendentals=0,
        bytes_accessed=n_pad_m * n_pad_k * a_item
                       + (1 if resident_e else grid[0]) * n_e * in_dim * e_item
                       + n_pad_m * out_dim * jnp.dtype(out_dtype).itemsize
                       + param_b,
    )

    out = pl.pallas_call(
        kernel,
        out_shape=jax.ShapeDtypeStruct((n_pad_m, out_dim), out_dtype),
        grid_spec=pltpu.PrefetchScalarGridSpec(
            num_scalar_prefetch=0,
            grid=grid,
            in_specs=in_specs,
            out_specs=out_spec,
            scratch_shapes=[pltpu.VMEM((tm, in_dim), jnp.float32)],
        ),
        compiler_params=pltpu.CompilerParams(
            dimension_semantics=("parallel", "arbitrary"),
            vmem_limit_bytes=vmem_limit),
        cost_estimate=cost,
    )(*inputs)

    return out[:n] if n_pad_m > n else out


# --------------------- deterministic parameter init ---------------------------

def xavier_uniform(key, out_dim, in_dim):
    # matches torch.nn.init.xavier_uniform_ on a (out_dim, in_dim) weight
    bound = math.sqrt(6.0 / (in_dim + out_dim))
    return jax.random.uniform(key, (out_dim, in_dim), jnp.float32, -bound, bound)


def linear_bias(key, in_dim, out_dim):
    # torch.nn.Linear default bias init: U(-1/sqrt(fan_in), 1/sqrt(fan_in))
    bound = 1.0 / math.sqrt(in_dim)
    return jax.random.uniform(key, (1, out_dim), jnp.float32, -bound, bound)


# ------------------------------ reference --------------------------------------

def reference(ego, a_in, params, aggregator_type):
    side = a_in @ ego
    if aggregator_type == "gcn":
        w, b = params
        return _leaky_relu((ego + side) @ w + b)
    if aggregator_type == "graphsage":
        w_ego, w_side, b = params
        return _leaky_relu(ego @ w_ego + side @ w_side + b)
    if aggregator_type == "bi-interaction":
        w1, b1, w2, b2 = params
        return (_leaky_relu((ego + side) @ w1 + b1)
                + _leaky_relu((ego * side) @ w2 + b2))
    raise NotImplementedError


# ------------------------------ main -------------------------------------------

if __name__ == "__main__":
    key = jax.random.PRNGKey(0)
    # N deliberately NOT a tile multiple, to exercise the rectangular padding path.
    N, IN_DIM, OUT_DIM = 200, 32, 32

    ks = jax.random.split(key, 10)
    ego = jax.random.normal(ks[0], (N, IN_DIM), jnp.float32)
    # dense stand-in for the sparse Laplacian A_in (row-normalized random graph)
    a_raw = (jax.random.uniform(ks[1], (N, N)) < 0.1).astype(jnp.float32)
    a_in = a_raw / jnp.maximum(a_raw.sum(axis=1, keepdims=True), 1.0)

    # bi-interaction params (KGAT default)
    w1 = xavier_uniform(ks[2], OUT_DIM, IN_DIM).T          # (in, out)
    b1 = linear_bias(ks[3], IN_DIM, OUT_DIM)
    w2 = xavier_uniform(ks[4], OUT_DIM, IN_DIM).T
    b2 = linear_bias(ks[5], IN_DIM, OUT_DIM)
    bi_params = (w1, b1, w2, b2)

    # gcn params
    wg = xavier_uniform(ks[6], OUT_DIM, IN_DIM).T
    bg = linear_bias(ks[7], IN_DIM, OUT_DIM)
    gcn_params = (wg, bg)

    # graphsage params: weight is (out, 2*in); split into ego / side halves
    ws_full = xavier_uniform(ks[8], OUT_DIM, 2 * IN_DIM)
    bs = linear_bias(ks[9], 2 * IN_DIM, OUT_DIM)
    sage_params = (ws_full[:, :IN_DIM].T, ws_full[:, IN_DIM:].T, bs)

    # Hoisted prep: pad + bf16-cast A/E once, reuse across all "layers" below.
    prep = prepare_aggregator_inputs(ego, a_in)

    # Tolerance covers bf16 storage of A *and* E plus TPU matmul precision modes
    # (intentional ~0.4% relative trade; pass a_dtype/e_dtype=None to opt out).
    # Genuine indexing/tiling bugs produce O(1) errors and still fail this gate.
    TOL = 3e-2
    cases = [
        # default fast path: bf16 A + bf16 E, resident E, prep reused across calls
        ("bi-interaction", bi_params, dict(prepared=prep)),
        ("gcn", gcn_params, dict(prepared=prep)),
        ("graphsage", sage_params, dict(prepared=prep)),
        # all-f32 + streamed-E fallback path
        ("bi-interaction", bi_params,
         dict(a_dtype=None, e_dtype=None, force_stream_e=True)),
        # f32, small tiles -> multi-step k accumulation and 4-strip parallel axis
        ("gcn", gcn_params, dict(a_dtype=None, e_dtype=None, tm=64, tk=128)),
    ]

    ok = True
    for agg_type, prm, kw in cases:
        out = jax.block_until_ready(
            aggregator_forward(ego, a_in, prm, agg_type, **kw))
        ref = reference(ego, a_in, prm, agg_type)
        good = bool(jnp.allclose(out, ref, atol=TOL, rtol=TOL))
        if not good:
            err = float(jnp.max(jnp.abs(out - ref)))
            print(f"MISMATCH {agg_type} {kw.keys()}: max abs err {err:.3e}")
        ok = ok and good

    if ok:
        print("KERNEL_OK")
    else:
        print("MISMATCH")
</pallas_src>

<mosaic_0001>
module attributes {stable_mosaic.version = 11 : i64} {
  func.func @kernel(%arg0: i32, %arg1: i32, %arg2: memref<256x32xbf16, #tpu.memory_space<vmem>>, %arg3: memref<128x256xbf16, #tpu.memory_space<vmem>>, %arg4: memref<32x32xf32, #tpu.memory_space<vmem>>, %arg5: memref<1x32xf32, #tpu.memory_space<vmem>>, %arg6: memref<32x32xf32, #tpu.memory_space<vmem>>, %arg7: memref<1x32xf32, #tpu.memory_space<vmem>>, %arg8: memref<128x32xf32, #tpu.memory_space<vmem>>, %arg9: memref<128x32xf32, #tpu.memory_space<vmem>>) attributes {dimension_semantics = [#tpu.dimension_semantics<parallel>, #tpu.dimension_semantics<arbitrary>], iteration_bounds = array<i64: 2, 1>, scalar_prefetch = 0 : i64, scratch_operands = 1 : i64, tpu.core_type = #tpu.core_type<tc>, window_params = [{pipeline_mode = #tpu.pipeline_mode<synchronous>, transform_indices = @transform_0, window_bounds = array<i64: 256, 32>}, {transform_indices = @transform_1, window_bounds = array<i64: 128, 256>}, {pipeline_mode = #tpu.pipeline_mode<synchronous>, transform_indices = @transform_2, window_bounds = array<i64: 32, 32>}, {pipeline_mode = #tpu.pipeline_mode<synchronous>, transform_indices = @transform_3, window_bounds = array<i64: 1, 32>}, {pipeline_mode = #tpu.pipeline_mode<synchronous>, transform_indices = @transform_4, window_bounds = array<i64: 32, 32>}, {pipeline_mode = #tpu.pipeline_mode<synchronous>, transform_indices = @transform_5, window_bounds = array<i64: 1, 32>}, {transform_indices = @transform_6, window_bounds = array<i64: 128, 32>}]} {
    %c256_i32 = arith.constant 256 : i32
    %0 = arith.muli %arg1, %c256_i32 : i32
    %1 = tpu.assume_multiple %0, 256 : i32
    %2 = arith.index_cast %1 : i32 to index
    %c0 = arith.constant 0 : index
    %3 = vector.load %arg2[%2, %c0] : memref<256x32xbf16, #tpu.memory_space<vmem>>, vector<256x32xbf16>
    %c0_i32 = arith.constant 0 : i32
    %4 = arith.cmpi eq, %arg1, %c0_i32 : i32
    %5 = arith.extui %4 : i1 to i32
    %c0_i32_0 = arith.constant 0 : i32
    %6 = arith.cmpi ne, %5, %c0_i32_0 : i32
    scf.if %6 {
      %cst_9 = arith.constant 0.000000e+00 : f32
      %15 = vector.broadcast %cst_9 : f32 to vector<128x32xf32>
      %c0_10 = arith.constant 0 : index
      %c0_11 = arith.constant 0 : index
      %16 = vector.load %arg9[%c0_10, %c0_11] : memref<128x32xf32, #tpu.memory_space<vmem>>, vector<128x32xf32>
      tpu.vector_store %arg9[%c0_10, %c0_11], %15 {strides = array<i32>} : memref<128x32xf32, #tpu.memory_space<vmem>>, vector<128x32xf32>,
    } else {
    }
    %c0_1 = arith.constant 0 : index
    %c0_2 = arith.constant 0 : index
    %7 = vector.load %arg9[%c0_1, %c0_2] : memref<128x32xf32, #tpu.memory_space<vmem>>, vector<128x32xf32>
    %c0_3 = arith.constant 0 : index
    %c0_4 = arith.constant 0 : index
    %8 = vector.load %arg3[%c0_3, %c0_4] : memref<128x256xbf16, #tpu.memory_space<vmem>>, vector<128x256xbf16>
    %cst = arith.constant dense<0.000000e+00> : vector<128x32xf32>
    %9 = tpu.matmul %8, %3, %cst {dimension_numbers = #tpu.dot_dimension_numbers<[1], [0], [0], [1], [0, 0, 1, 1], [], []>} : vector<128x256xbf16>, vector<256x32xbf16>, vector<128x32xf32> -> vector<128x32xf32>
    %10 = arith.addf %7, %9 : vector<128x32xf32>
    %c0_5 = arith.constant 0 : index
    %c0_6 = arith.constant 0 : index
    %11 = vector.load %arg9[%c0_5, %c0_6] : memref<128x32xf32, #tpu.memory_space<vmem>>, vector<128x32xf32>
    tpu.vector_store %arg9[%c0_5, %c0_6], %10 {strides = array<i32>} : memref<128x32xf32, #tpu.memory_space<vmem>>, vector<128x32xf32>,
    %c0_i32_7 = arith.constant 0 : i32
    %12 = arith.cmpi eq, %arg1, %c0_i32_7 : i32
    %13 = arith.extui %12 : i1 to i32
    %c0_i32_8 = arith.constant 0 : i32
    %14 = arith.cmpi ne, %13, %c0_i32_8 : i32
    scf.if %14 {
      %c128_i32 = arith.constant 128 : i32
      %15 = arith.muli %arg0, %c128_i32 : i32
      %16 = tpu.assume_multiple %15, 128 : i32
      %17 = arith.index_cast %16 : i32 to index
      %c0_9 = arith.constant 0 : index
      %18 = vector.load %arg2[%17, %c0_9] : memref<256x32xbf16, #tpu.memory_space<vmem>>, vector<128x32xbf16>
      %19 = arith.extf %18 : vector<128x32xbf16> to vector<128x32xf32>
      %c0_10 = arith.constant 0 : index
      %c0_11 = arith.constant 0 : index
      %20 = vector.load %arg9[%c0_10, %c0_11] : memref<128x32xf32, #tpu.memory_space<vmem>>, vector<128x32xf32>
      %21 = arith.addf %19, %20 : vector<128x32xf32>
      %c0_12 = arith.constant 0 : index
      %c0_13 = arith.constant 0 : index
      %22 = vector.load %arg4[%c0_12, %c0_13] : memref<32x32xf32, #tpu.memory_space<vmem>>, vector<32x32xf32>
      %cst_14 = arith.constant dense<0.000000e+00> : vector<128x32xf32>
      %23 = tpu.matmul %21, %22, %cst_14 {dimension_numbers = #tpu.dot_dimension_numbers<[1], [0], [0], [1], [0, 0, 1, 1], [], []>} : vector<128x32xf32>, vector<32x32xf32>, vector<128x32xf32> -> vector<128x32xf32>
      %c0_15 = arith.constant 0 : index
      %c0_16 = arith.constant 0 : index
      %24 = vector.load %arg5[%c0_15, %c0_16] : memref<1x32xf32, #tpu.memory_space<vmem>>, vector<1x32xf32>
      %25 = vector.broadcast %24 : vector<1x32xf32> to vector<128x32xf32>
      %26 = arith.addf %23, %25 : vector<128x32xf32>
      %cst_17 = arith.constant 0.000000e+00 : f32
      %27 = vector.broadcast %cst_17 : f32 to vector<128x32xf32>
      %28 = arith.cmpf oge, %26, %27 : vector<128x32xf32>
      %cst_18 = arith.constant 0.00999999977 : f32
      %29 = vector.broadcast %cst_18 : f32 to vector<128x32xf32>
      %30 = arith.mulf %29, %26 : vector<128x32xf32>
      %31 = arith.select %28, %26, %30 : vector<128x32xi1>, vector<128x32xf32>
      %32 = arith.mulf %19, %20 : vector<128x32xf32>
      %c0_19 = arith.constant 0 : index
      %c0_20 = arith.constant 0 : index
      %33 = vector.load %arg6[%c0_19, %c0_20] : memref<32x32xf32, #tpu.memory_space<vmem>>, vector<32x32xf32>
      %cst_21 = arith.constant dense<0.000000e+00> : vector<128x32xf32>
      %34 = tpu.matmul %32, %33, %cst_21 {dimension_numbers = #tpu.dot_dimension_numbers<[1], [0], [0], [1], [0, 0, 1, 1], [], []>} : vector<128x32xf32>, vector<32x32xf32>, vector<128x32xf32> -> vector<128x32xf32>
      %c0_22 = arith.constant 0 : index
      %c0_23 = arith.constant 0 : index
      %35 = vector.load %arg7[%c0_22, %c0_23] : memref<1x32xf32, #tpu.memory_space<vmem>>, vector<1x32xf32>
      %36 = vector.broadcast %35 : vector<1x32xf32> to vector<128x32xf32>
      %37 = arith.addf %34, %36 : vector<128x32xf32>
      %cst_24 = arith.constant 0.000000e+00 : f32
      %38 = vector.broadcast %cst_24 : f32 to vector<128x32xf32>
      %39 = arith.cmpf oge, %37, %38 : vector<128x32xf32>
      %cst_25 = arith.constant 0.00999999977 : f32
      %40 = vector.broadcast %cst_25 : f32 to vector<128x32xf32>
      %41 = arith.mulf %40, %37 : vector<128x32xf32>
      %42 = arith.select %39, %37, %41 : vector<128x32xi1>, vector<128x32xf32>
      %43 = arith.addf %31, %42 : vector<128x32xf32>
      %c0_26 = arith.constant 0 : index
      %c0_27 = arith.constant 0 : index
      %44 = vector.load %arg8[%c0_26, %c0_27] : memref<128x32xf32, #tpu.memory_space<vmem>>, vector<128x32xf32>
      tpu.vector_store %arg8[%c0_26, %c0_27], %43 {strides = array<i32>} : memref<128x32xf32, #tpu.memory_space<vmem>>, vector<128x32xf32>,
    } else {
    }
    return
  }
  func.func @transform_0(%arg0: i32, %arg1: i32) -> (i32, i32) {
    %c0_i32 = arith.constant 0 : i32
    %c0_i32_0 = arith.constant 0 : i32
    %c0_i32_1 = arith.constant 0 : i32
    return %c0_i32, %c0_i32_0 : i32, i32
  }
  func.func @transform_1(%arg0: i32, %arg1: i32) -> (i32, i32) {
    %c0_i32 = arith.constant 0 : i32
    return %arg0, %arg1 : i32, i32
  }
  func.func @transform_2(%arg0: i32, %arg1: i32) -> (i32, i32) {
    %c0_i32 = arith.constant 0 : i32
    %c0_i32_0 = arith.constant 0 : i32
    %c0_i32_1 = arith.constant 0 : i32
    return %c0_i32, %c0_i32_0 : i32, i32
  }
  func.func @transform_3(%arg0: i32, %arg1: i32) -> (i32, i32) {
    %c0_i32 = arith.constant 0 : i32
    %c0_i32_0 = arith.constant 0 : i32
    %c0_i32_1 = arith.constant 0 : i32
    return %c0_i32, %c0_i32_0 : i32, i32
  }
  func.func @transform_4(%arg0: i32, %arg1: i32) -> (i32, i32) {
    %c0_i32 = arith.constant 0 : i32
    %c0_i32_0 = arith.constant 0 : i32
    %c0_i32_1 = arith.constant 0 : i32
    return %c0_i32, %c0_i32_0 : i32, i32
  }
  func.func @transform_5(%arg0: i32, %arg1: i32) -> (i32, i32) {
    %c0_i32 = arith.constant 0 : i32
    %c0_i32_0 = arith.constant 0 : i32
    %c0_i32_1 = arith.constant 0 : i32
    return %c0_i32, %c0_i32_0 : i32, i32
  }
  func.func @transform_6(%arg0: i32, %arg1: i32) -> (i32, i32) {
    %c0_i32 = arith.constant 0 : i32
    %c0_i32_0 = arith.constant 0 : i32
    return %arg0, %c0_i32 : i32, i32
  }
}

</mosaic_0001>

<bundles_post_ra>
// kernel: tpu_custom_call.1
= control target key start
LH: loop header
LB: loop body
LE: loop exit
PB: predicated region body
PF: predicated region fallthrough
CT: control target
= control target key end

     0   :  { %11 = vsyncpa [#allocation4], 0  ;;  %s2388_s0 = inlined_call_operand.vmem [shape: bf16[256,32], index: 0, kind: input, shape index: {}]   ;;  %s2389_s1 = inlined_call_operand.hbm [shape: bf16[256,256], index: 1, kind: input, shape index: {}]   ;;  %s2390_s2 = inlined_call_operand.vmem [shape: f32[32,32], index: 2, kind: input, shape index: {}]   ;;  %s2391_s3 = inlined_call_operand.vmem [shape: f32[1,32], index: 3, kind: input, shape index: {}]   ;;  %s2392_s4 = inlined_call_operand.vmem [shape: f32[32,32], index: 4, kind: input, shape index: {}]   ;;  %s2393_s5 = inlined_call_operand.vmem [shape: f32[1,32], index: 5, kind: input, shape index: {}]   ;;  %s2394_s6 = inlined_call_operand.vmem [shape: f32[256,32], index: 6, kind: output, shape index: {}]  }
   0x1   :  { %13 = vsyncpa [#allocation4 + $0x1], 0  ;;  %s1904_s21 = smov 0   ;;  %s1906_s22 = smov 0  }
   0x2   :  { %s1908_s23 = smov 0   ;;  %s1910_s24 = smov 0  }
   0x3   :  { %s1912_s25 = smov 0   ;;  %s1914_s26 = smov 0  }
   0x4 LB: > { %s1396_s27 = sadd.s32 4294967295, %s1863_s26   ;;  %s31_s28 = sadd.s32 1, %s1859_s25  ;;  %s1863_s26 = sphi %s1914_s26, %s19_s26   ;;  %s1859_s25 = sphi %s1912_s25, %s2402_s25   ;;  %s1855_s24 = sphi %s1910_s24, %s2401_s24   ;;  %s1851_s23 = sphi %s1908_s23, %s2400_s23   ;;  %s1847_s22 = sphi %s1906_s22, %s2399_s22   ;;  %s1843_s21 = sphi %s1904_s21, %s2398_s21  }
   0x5   : > { %p33_p0 = scmp.ge.s32.totalorder %s31_s28, 2  ;;  %s61_s29 = sadd.s32 1, %s1851_s23 }
   0x6   : > { %p68_p1 = scmp.ne.s32.totalorder %s1851_s23, %s1847_s22  ;;  %p69_p2 = scmp.eq.s32.totalorder %s1863_s26, 0 }
   0x7   : > { %s2404_s28 = smov (%p33_p0, %s31_s28), 0  ;;  %p74_p4 = scmp.ne.s32.totalorder %s1847_s22, %s1843_s21 }
   0x8   : > { %p1940_p3 = por %p69_p2, %p68_p1  ;;  %s56_s7 = ssub.s32 %s1859_s25, %s2404_s28 }
   0x9   : > { %p75_p5 = scmp.eq.s32.totalorder %s1396_s27, 0  ;;  %p59_p6 = scmp.eq.s32.totalorder %s56_s7, 0 }
   0xa   : > { %p1693_p8 = scmp.lt.s32.totalorder %s1863_s26, 2  ;;  %s223_s10 = sand.u32 1, %s1851_s23  }
   0xb   : > { %p1947_p7 = por %p75_p5, %p74_p4  ;;  %s1479_s11 = sshll.u32 %s1859_s25, 11 }
   0xc   : > { %s1953_s9 = scalar_select %p59_p6, %s1851_s23, %s61_s29  }
   0xd   : > { %s1400_s12 = sshll.u32 %s223_s10, 7  ;;  %s236_s15 = scalar_lea.hbm %s2389_s1, %s1479_s11 }
   0xe   : > { %s227_s16 = scalar_lea.vmem [#allocation3], %s1400_s12  ;;  %p1962_p9 = pnand %p1693_p8, %p1940_p3 }
   0xf   : > { %s237_s17 = sshll.u32 %s227_s16, 4  ;;  %s224_s19 = scalar_lea.sflag [#allocation4], %s223_s10  ;;  %s238_s17 = int_to_ptr.vmem [resolvable:$true] %s237_s17 }
  0x10   : > { %p1787_p10 = pneg %p1962_p9  ;;  %s1798_s20 = scalar_lea.vmem %s238_s17, 2048 }
  0x11   : > { %p1799_p11 = scmp.ne.s32.totalorder %s238_s17, %s1798_s20  ;;  %s1865_s21 = smov [#allocation3]  }
  0x12   : > { %s1803_s27 = sshll.u32 %s1865_s21, 4  ;;  %s1804_s27 = int_to_ptr.vmem [resolvable:$false] %s1803_s27 }
  0x13   : > { %p1801_p12 = pnand %p1799_p11, %p1787_p10  ;;  %s1805_s29 = scalar_lea.vmem %s1804_s27, 4096 }
  0x14   : > { %p1806_p0 = scmp.lt.s32.totalorder %s238_s17, %s1804_s27  ;;  %p1807_p1 = scmp.lt.s32.totalorder %s1805_s29, %s1798_s20 }
  0x15   : > { %p1802_p13 = pneg %p1801_p12 }
  0x16   : > { %p1808_p2 = por %p1807_p1, %p1806_p0 }
  0x18   : > { %p1809_p3 = pnand %p1808_p2, %p1802_p13 }
  0x1a   : > { %1812 = shalt.err (!%p1809_p3)
}
  0x1b   : > { %s1866_s30 = smov 128   ;;  %s1867_s7 = smov 8  }
  0x1c   : > { %1692 = dma.hbm_to_vmem [thread:$0]  (!%p1962_p9), %s236_s15, 2048, %s238_s17, %s224_s19, %s1866_s30, %s1866_s30, %s1867_s7  }
  0x1d   : > { %p1404_p4 = scmp.ge.s32.totalorder %s1863_s26, 1  ;;  %p245_p5 = scmp.lt.s32.totalorder %s1863_s26, 3 }
  0x1f   : > { %p246_p6 = pnand %p1404_p4, %p245_p5 }
  0x20   : > { %s251_s10 = sand.u32 (!%p246_p6), 1, %s1847_s22  }
  0x21   : > { %249 = sbr.rel (%p246_p6) target bundleno = 576 (0x240), region = 44  ;;  %s1405_s11 = sshll.u32 (!%p246_p6), %s251_s10, 7 }
  0x22   : > { %s252_s12 = scalar_lea.sflag (!%p246_p6), [#allocation4], %s251_s10  ;;  %s1973_s13 = scalar_lea.vmem (!%p246_p6), [#allocation3], %s1405_s11 }
  0x26   : > { %1838 = dma.done.wait (%p1947_p7), %s252_s12, 2048  }
  0x27   : > { %1840 = vsyncadd (%p1947_p7), %s252_s12, 4294965248  ;;  %v1745_v0 = vld [vmem:[%s2388_s0 + $0x78] sm:$0xff]   ;;  %v1747_v2 = vld [vmem:[%s2388_s0 + $0x70] sm:$0xff]   ;;  %vm334_vm0 = vcmask 261120   ;;  %v1868_v32 = vmov 0.0   ;;  %s1440_s27 = sshll.u32 %s1855_s24, 7 }
  0x28   : > { %v1746_v1 = vld [vmem:[%s2388_s0 + $0x38] sm:$0xff]   ;;  %1519 = vmatprep.subr.bf16.mxu0 %v1745_v0  ;;  %v1748_v3 = vld [vmem:[%s2388_s0 + $0x30] sm:$0xff]   ;;  %v1749_v4 = vld [vmem:[%s2388_s0 + $0x68] sm:$0xff]   ;;  %335 = vst.msk [vmem:[#allocation2] sm:$0xff] %vm334_vm0, %v1868_v32  ;;  %s693_s29 = sshra.s32 %s1440_s27, 3  ;;  %s1406_s18 = sshll.u32 %s1855_s24, 4 }
  0x29   : > { %1520 = vmatpush3.bf16.msra.mxu0 %v1746_v1  ;;  %v1750_v5 = vld [vmem:[%s2388_s0 + $0x28] sm:$0xff]   ;;  %v1751_v6 = vld [vmem:[%s2388_s0 + $0x60] sm:$0xff]   ;;  %v1753_v8 = vld [vmem:[%s2388_s0 + $0x58] sm:$0xff]   ;;  %336 = vst.msk [vmem:[#allocation2 + $0x8] sm:$0xff] %vm334_vm0, %v1868_v32  ;;  %s1441_s30 = sshll.u32 %s693_s29, 2  ;;  %p287_p7 = scmp.lt.s32.totalorder %s1406_s18, 31 }
  0x2a   : > { %1521 = vmatprep.subr.bf16.mxu0 %v1747_v2  ;;  %v1752_v7 = vld [vmem:[%s2388_s0 + $0x20] sm:$0xff]   ;;  %v1754_v9 = vld [vmem:[%s2388_s0 + $0x18] sm:$0xff]   ;;  %v1755_v10 = vld [vmem:[%s2388_s0 + $0x50] sm:$0xff]   ;;  %337 = vst.msk [vmem:[#allocation2 + $0x10] sm:$0xff] %vm334_vm0, %v1868_v32  ;;  %s2078_s11 = scalar_lea.vmem %s2388_s0, %s1441_s30 }
  0x2b   : > { %v1763_v11 = vld [vmem:[%s1973_s13 + $0x4] ss:$8 sps:$4 sm:$0xff]   ;;  %v1756_v12 = vld [vmem:[%s2388_s0 + $0x10] sm:$0xff]   ;;  %v1761_v17 = vld [vmem:[%s1973_s13] ss:$8 sps:$4 sm:$0xff]   ;;  %338 = vst.msk [vmem:[#allocation2 + $0x18] sm:$0xff] %vm334_vm0, %v1868_v32 }
  0x2c   : > { %591 = vmatprep.mubr.bf16.mxu0 %v1763_v11  ;;  %v1757_v13 = vld [vmem:[%s2388_s0 + $0x48] sm:$0xff]   ;;  %v1759_v15 = vld [vmem:[%s2388_s0 + $0x40] sm:$0xff]   ;;  %v1764_v18 = vld [vmem:[%s1973_s13 + $0x14] ss:$8 sps:$4 sm:$0xff]   ;;  %339 = vst.msk [vmem:[#allocation2 + $0x20] sm:$0xff] %vm334_vm0, %v1868_v32  ;;  %s2406_s18 = smov (!%p287_p7, %s1406_s18), 31 }
  0x2d   : > { %1522 = vmatpush3.bf16.msra.mxu0 %v1748_v3  ;;  %v1758_v14 = vld [vmem:[%s2388_s0 + $0x8] sm:$0xff]   ;;  %v1760_v16 = vld [vmem:[%s2388_s0] sm:$0xff]   ;;  %v1766_v19 = vld [vmem:[%s1973_s13 + $0x10] ss:$8 sps:$4 sm:$0xff]   ;;  %340 = vst.msk [vmem:[#allocation2 + $0x28] sm:$0xff] %vm334_vm0, %v1868_v32  ;;  %s1407_s8 = sshll.u32 %s2406_s18, 3 }
  0x2e   : > { %1523 = vmatprep.subr.bf16.mxu0 %v1749_v4  ;;  %v1767_v20 = vld [vmem:[%s1973_s13 + $0x24] ss:$8 sps:$4 sm:$0xff]   ;;  %v1769_v21 = vld [vmem:[%s1973_s13 + $0x20] ss:$8 sps:$4 sm:$0xff]   ;;  %v1770_v22 = vld [vmem:[%s1973_s13 + $0x34] ss:$8 sps:$4 sm:$0xff]   ;;  %s2296_s30 = scalar_lea.vmem %s2394_s6, %s1407_s8 }
  0x2f   : > { %v1772_v23 = vld [vmem:[%s1973_s13 + $0x30] ss:$8 sps:$4 sm:$0xff]   ;;  %v1773_v24 = vld [vmem:[%s1973_s13 + $0x44] ss:$8 sps:$4 sm:$0xff]   ;;  %v1775_v25 = vld [vmem:[%s1973_s13 + $0x40] ss:$8 sps:$4 sm:$0xff]  }
  0x30   : > { %v1776_v26 = vld [vmem:[%s1973_s13 + $0x54] ss:$8 sps:$4 sm:$0xff]   ;;  %v1778_v27 = vld [vmem:[%s1973_s13 + $0x50] ss:$8 sps:$4 sm:$0xff]   ;;  %v1779_v28 = vld [vmem:[%s1973_s13 + $0x64] ss:$8 sps:$4 sm:$0xff]  }
  0x31   : > { %1524 = vmatpush3.bf16.msra.mxu0 %v1750_v5  ;;  %v1781_v29 = vld [vmem:[%s1973_s13 + $0x60] ss:$8 sps:$4 sm:$0xff]   ;;  %v1782_v30 = vld [vmem:[%s1973_s13 + $0x74] ss:$8 sps:$4 sm:$0xff]   ;;  %v1784_v31 = vld [vmem:[%s1973_s13 + $0x70] ss:$8 sps:$4 sm:$0xff]  }
  0x32   : > { %1525 = vmatprep.subr.bf16.mxu0 %v1751_v6  ;;  %341 = vst.msk [vmem:[#allocation2 + $0x30] sm:$0xff] %vm334_vm0, %v1868_v32  ;;  %342 = vst.msk [vmem:[#allocation2 + $0x38] sm:$0xff] %vm334_vm0, %v1868_v32  ;;  %v764_v33 = vld [vmem:[%s2390_s2 + $0x18] sm:$0xff]  ;;  %v763_v34 = vld [vmem:[%s2390_s2 + $0x10] sm:$0xff] }
  0x33   : > { %343 = vst.msk [vmem:[#allocation2 + $0x40] sm:$0xff] %vm334_vm0, %v1868_v32  ;;  %344 = vst.msk [vmem:[#allocation2 + $0x48] sm:$0xff] %vm334_vm0, %v1868_v32  ;;  %1623 = vmatprep.subr.mxu1 %v764_v33  ;;  %v762_v35 = vld [vmem:[%s2390_s2 + $0x8] sm:$0xff]  ;;  %v761_v36 = vld [vmem:[%s2390_s2] sm:$0xff] }
  0x34   : > { %345 = vst.msk [vmem:[#allocation2 + $0x50] sm:$0xff] %vm334_vm0, %v1868_v32  ;;  %346 = vst.msk [vmem:[#allocation2 + $0x58] sm:$0xff] %vm334_vm0, %v1868_v32  ;;  %1624 = vmatpush3.msra.mxu1 %v764_v33  ;;  %v1032_v37 = vld [vmem:[%s2392_s4 + $0x18] sm:$0xff]  ;;  %v351_v39 = vld [vmem:[#allocation2] sm:$0xff] }
  0x35   : > { %1526 = vmatpush3.bf16.msra.mxu0 %v1752_v7  ;;  %347 = vst.msk [vmem:[#allocation2 + $0x60] sm:$0xff] %vm334_vm0, %v1868_v32  ;;  %348 = vst.msk [vmem:[#allocation2 + $0x68] sm:$0xff] %vm334_vm0, %v1868_v32  ;;  %1625 = vmatprep.subr.mxu1 %v763_v34  ;;  %v352_v44 = vld [vmem:[#allocation2 + $0x8] sm:$0xff]  ;;  %v2082_v48 = vld [vmem:[%s2078_s11] sm:$0xff]  }
  0x36   : > { %1527 = vmatprep.subr.bf16.mxu0 %v1753_v8  ;;  %349 = vst.msk [vmem:[#allocation2 + $0x70] sm:$0xff] %vm334_vm0, %v1868_v32  ;;  %350 = vst.msk [vmem:[#allocation2 + $0x78] sm:$0xff] %vm334_vm0, %v1868_v32  ;;  %1626 = vmatpush3.msra.mxu1 %v763_v34  ;;  %v353_v50 = vld [vmem:[#allocation2 + $0x10] sm:$0xff]  ;;  %v1482_v53 = vunpack.c.l.bf16 %v2082_v48  ;;  %v354_v56 = vld [vmem:[#allocation2 + $0x18] sm:$0xff]  ;;  %v1483_v60 = vunpack.c.h.bf16 %v2082_v48 }
  0x37   : > { %1627 = vmatprep.subr.mxu1 %v762_v35  ;;  %v2094_v63 = vld [vmem:[%s2078_s11 + $0x8] sm:$0xff]   ;;  %v355_v2 = vld [vmem:[#allocation2 + $0x20] sm:$0xff]  ;;  %v1031_v8 = vld [vmem:[%s2392_s4 + $0x10] sm:$0xff] }
  0x38   : > { %1628 = vmatpush3.msra.mxu1 %v762_v35  ;;  %v1486_v6 = vunpack.c.l.bf16 %v2094_v63 }
  0x39   : > { %1528 = vmatpush3.bf16.msra.mxu0 %v1754_v9  ;;  %1629 = vmatprep.subr.mxu1 %v761_v36 }
  0x3a   : > { %1529 = vmatprep.subr.bf16.mxu0 %v1755_v10  ;;  %1630 = vmatpush3.msra.mxu1 %v761_v36  ;;  %v356_v10 = vld [vmem:[#allocation2 + $0x28] sm:$0xff]  ;;  %v2141_v36 = vld [vmem:[%s2078_s11 + $0x18] sm:$0xff]  }
  0x3b   : > { %1655 = vmatprep.subr.mxu1 %v1032_v37 }
  0x3d   : > { %1530 = vmatpush3.bf16.msra.mxu0 %v1756_v12 }
  0x3e   : > { %1531 = vmatprep.subr.bf16.mxu0 %v1757_v13  ;;  %v1030_v13 = vld [vmem:[%s2392_s4 + $0x8] sm:$0xff] }
  0x41   : > { %1532 = vmatpush3.bf16.msra.mxu0 %v1758_v14 }
  0x42   : > { %1533 = vmatprep.subr.bf16.mxu0 %v1759_v15 }
  0x45   : > { %1534 = vmatpush3.bf16.msra.mxu0 %v1760_v16  ;;  %v1487_v16 = vunpack.c.h.bf16 %v2094_v63 }
  0x48   : > { %592 = vmatmul.mubr.bf16.vlgmr.msra.gmra.mxu0 %v1761_v17 }
  0x49   : > { %599 = vmatprep.mubr.bf16.mxu0 %v1764_v18  ;;  %v2119_v18 = vld [vmem:[%s2078_s11 + $0x10] sm:$0xff]  }
  0x4a   : > { %v1491_v34 = vunpack.c.h.bf16 %v2119_v18 }
  0x50   : > { %600 = vmatmul.mubr.bf16.gmra.mxu0 %v1766_v19  ;;  %v1029_v19 = vld [vmem:[%s2392_s4] sm:$0xff] }
  0x51   : > { %607 = vmatprep.mubr.bf16.mxu0 %v1767_v20 }
  0x58   : > { %608 = vmatmul.mubr.bf16.gmra.mxu0 %v1769_v21  ;;  %v357_v21 = vld [vmem:[#allocation2 + $0x30] sm:$0xff] }
  0x59   : > { %615 = vmatprep.mubr.bf16.mxu0 %v1770_v22 }
  0x60   : > { %616 = vmatmul.mubr.bf16.gmra.mxu0 %v1772_v23 }
  0x61   : > { %623 = vmatprep.mubr.bf16.mxu0 %v1773_v24 }
  0x68   : > { %624 = vmatmul.mubr.bf16.gmra.mxu0 %v1775_v25 }
  0x69   : > { %631 = vmatprep.mubr.bf16.mxu0 %v1776_v26  ;;  %v1490_v26 = vunpack.c.l.bf16 %v2119_v18 }
  0x70   : > { %632 = vmatmul.mubr.bf16.gmra.mxu0 %v1778_v27 }
  0x71   : > { %639 = vmatprep.mubr.bf16.mxu0 %v1779_v28 }
  0x78   : > { %640 = vmatmul.mubr.bf16.gmra.mxu0 %v1781_v29  ;;  %v358_v29 = vld [vmem:[#allocation2 + $0x38] sm:$0xff] }
  0x79   : > { %647 = vmatprep.mubr.bf16.mxu0 %v1782_v30 }
  0x80   : > { %648 = vmatmul.mubr.bf16.gmra.mxu0 %v1784_v31 }
 0x108   : > { %v1535_v38 = vpop.f32.mrf.mxu0 }
 0x10a   : > { %v1536_v40 = vpop.f32.mrf.mxu0 }
 0x10b   : > { %v1537_v41 = vadd.f32 %v1536_v40, %v1535_v38  ;;  %v359_v38 = vld [vmem:[#allocation2 + $0x40] sm:$0xff] }
 0x10c   : > { %v1538_v42 = vpop.f32.mrf.mxu0 }
 0x10d   : > { %v656_v43 = vadd.f32 %v1537_v41, %v351_v39 }
 0x10e   : > { %v1539_v45 = vpop.f32.mrf.mxu0 }
 0x10f   : > { %673 = vst.msk [vmem:[#allocation2] sm:$0xff] %vm334_vm0, %v656_v43  ;;  %v1540_v46 = vadd.f32 %v1539_v45, %v1538_v42  ;;  %v1494_v43 = vunpack.c.l.bf16 %v2141_v36 }
 0x110   : > { %v1541_v47 = vpop.f32.mrf.mxu0 }
 0x111   : > { %v657_v49 = vadd.f32 %v1540_v46, %v352_v44  ;;  %v360_v46 = vld [vmem:[#allocation2 + $0x48] sm:$0xff] }
 0x112   : > { %v1542_v51 = vpop.f32.mrf.mxu0 }
 0x113   : > { %674 = vst.msk [vmem:[#allocation2 + $0x8] sm:$0xff] %vm334_vm0, %v657_v49  ;;  %v1543_v52 = vadd.f32 %v1542_v51, %v1541_v47 }
 0x114   : > { %v1544_v54 = vpop.f32.mrf.mxu0 }
 0x115   : > { %v658_v55 = vadd.f32 %v1543_v52, %v353_v50  ;;  %v1495_v52 = vunpack.c.h.bf16 %v2141_v36 }
 0x116   : > { %v1545_v57 = vpop.f32.mrf.mxu0  ;;  %v2086_v58 = vld [vmem:[#allocation2] sm:$0xff] }
 0x117   : > { %675 = vst.msk [vmem:[#allocation2 + $0x10] sm:$0xff] %vm334_vm0, %v658_v55  ;;  %v1546_v59 = vadd.f32 %v1545_v57, %v1544_v54  ;;  %v745_v61 = vadd.f32 %v1482_v53, %v2086_v58  ;;  %v2160_v55 = vld [vmem:[%s2078_s11 + $0x20] sm:$0xff]   ;;  %v361_v57 = vld [vmem:[#allocation2 + $0x50] sm:$0xff] }
 0x118   : > { %v1547_v62 = vpop.f32.mrf.mxu0 }
 0x119   : > { %v659_v0 = vadd.f32 %v1546_v59, %v354_v56  ;;  %1631 = vmatprep.mubr.msk.f32.mxu1 %vm334_vm0, %v745_v61 }
 0x11a   : > { %v2097_v1 = vld [vmem:[#allocation2 + $0x8] sm:$0xff]  ;;  %v1548_v3 = vpop.f32.mrf.mxu0 }
 0x11b   : > { %676 = vst.msk [vmem:[#allocation2 + $0x18] sm:$0xff] %vm334_vm0, %v659_v0  ;;  %v1549_v4 = vadd.f32 %v1548_v3, %v1547_v62  ;;  %v746_v5 = vadd.f32 %v1483_v60, %v2097_v1 }
 0x11c   : > { %v1550_v7 = vpop.f32.mrf.mxu0 }
 0x11d   : > { %v660_v9 = vadd.f32 %v1549_v4, %v355_v2  ;;  %1632 = vmatmul.mubr.msk.f32.vlgmr.msra.gmra.mxu1 %vm334_vm0, %v746_v5  ;;  %v1498_v2 = vunpack.c.l.bf16 %v2160_v55  ;;  %v362_v5 = vld [vmem:[#allocation2 + $0x58] sm:$0xff] }
 0x11e   : > { %v1551_v11 = vpop.f32.mrf.mxu0  ;;  %v2108_v12 = vld [vmem:[#allocation2 + $0x10] sm:$0xff]  ;;  %1656 = vmatpush3.msra.mxu1 %v1032_v37 }
 0x11f   : > { %677 = vst.msk [vmem:[#allocation2 + $0x20] sm:$0xff] %vm334_vm0, %v660_v9  ;;  %v1552_v14 = vadd.f32 %v1551_v11, %v1550_v7  ;;  %v747_v15 = vadd.f32 %v1486_v6, %v2108_v12  ;;  %1657 = vmatprep.subr.mxu1 %v1031_v8  ;;  %v1499_v11 = vunpack.c.h.bf16 %v2160_v55 }
 0x120   : > { %v1553_v17 = vpop.f32.mrf.mxu0  ;;  %1658 = vmatpush3.msra.mxu1 %v1031_v8 }
 0x121   : > { %v661_v20 = vadd.f32 %v1552_v14, %v356_v10  ;;  %1634 = vmatprep.mubr.msk.f32.mxu1 %vm334_vm0, %v747_v15  ;;  %1659 = vmatprep.subr.mxu1 %v1030_v13  ;;  %v2179_v14 = vld [vmem:[%s2078_s11 + $0x28] sm:$0xff]  }
 0x122   : > { %v1554_v22 = vpop.f32.mrf.mxu0  ;;  %v2125_v23 = vld [vmem:[#allocation2 + $0x18] sm:$0xff]  ;;  %1660 = vmatpush3.msra.mxu1 %v1030_v13 }
 0x123   : > { %678 = vst.msk [vmem:[#allocation2 + $0x28] sm:$0xff] %vm334_vm0, %v661_v20  ;;  %v1555_v24 = vadd.f32 %v1554_v22, %v1553_v17  ;;  %v748_v25 = vadd.f32 %v1487_v16, %v2125_v23  ;;  %1661 = vmatprep.subr.mxu1 %v1029_v19  ;;  %v363_v17 = vld [vmem:[#allocation2 + $0x60] sm:$0xff] }
 0x124   : > { %v1556_v27 = vpop.f32.mrf.mxu0  ;;  %1662 = vmatpush3.msra.mxu1 %v1029_v19 }
 0x125   : > { %v662_v28 = vadd.f32 %v1555_v24, %v357_v21  ;;  %1635 = vmatmul.mubr.msk.f32.gmra.mxu1 %vm334_vm0, %v748_v25  ;;  %v1502_v24 = vunpack.c.l.bf16 %v2179_v14 }
 0x126   : > { %v1557_v30 = vpop.f32.mrf.mxu0  ;;  %v2133_v31 = vld [vmem:[#allocation2 + $0x20] sm:$0xff] }
 0x127   : > { %679 = vst.msk [vmem:[#allocation2 + $0x30] sm:$0xff] %vm334_vm0, %v662_v28  ;;  %v1558_v32 = vadd.f32 %v1557_v30, %v1556_v27  ;;  %v749_v33 = vadd.f32 %v1490_v26, %v2133_v31  ;;  %v364_v28 = vld [vmem:[#allocation2 + $0x68] sm:$0xff] }
 0x128   : > { %v1559_v35 = vpop.f32.mrf.mxu0 }
 0x129   : > { %v663_v37 = vadd.f32 %v1558_v32, %v358_v29  ;;  %1637 = vmatprep.mubr.msk.f32.mxu1 %vm334_vm0, %v749_v33 }
 0x12a   : > { %v1560_v39 = vpop.f32.mrf.mxu0  ;;  %v2144_v40 = vld [vmem:[#allocation2 + $0x28] sm:$0xff] }
 0x12b   : > { %680 = vst.msk [vmem:[#allocation2 + $0x38] sm:$0xff] %vm334_vm0, %v663_v37  ;;  %v1561_v41 = vadd.f32 %v1560_v39, %v1559_v35  ;;  %v750_v42 = vadd.f32 %v1491_v34, %v2144_v40  ;;  %v1503_v35 = vunpack.c.h.bf16 %v2179_v14  ;;  %v1018_v48 = vmul.f32 %v1491_v34, %v2144_v40 }
 0x12c   : > { %v1562_v44 = vpop.f32.mrf.mxu0 }
 0x12d   : > { %v664_v45 = vadd.f32 %v1561_v41, %v359_v38  ;;  %1638 = vmatmul.mubr.msk.f32.gmra.mxu1 %vm334_vm0, %v750_v42  ;;  %v1517_v38 = vld [vmem:[%s2078_s11 + $0x30] sm:$0xff]  }
 0x12e   : > { %v1563_v47 = vpop.f32.mrf.mxu0  ;;  %v2152_v49 = vld [vmem:[#allocation2 + $0x30] sm:$0xff] }
 0x12f   : > { %681 = vst.msk [vmem:[#allocation2 + $0x40] sm:$0xff] %vm334_vm0, %v664_v45  ;;  %v1564_v50 = vadd.f32 %v1563_v47, %v1562_v44  ;;  %v751_v51 = vadd.f32 %v1494_v43, %v2152_v49  ;;  %v365_v41 = vld [vmem:[#allocation2 + $0x70] sm:$0xff]  ;;  %v1506_v47 = vunpack.c.l.bf16 %v1517_v38 }
 0x130   : > { %v1565_v54 = vpop.f32.mrf.mxu0 }
 0x131   : > { %v665_v56 = vadd.f32 %v1564_v50, %v360_v46  ;;  %1640 = vmatprep.mubr.msk.f32.mxu1 %vm334_vm0, %v751_v51 }
 0x132   : > { %v1566_v59 = vpop.f32.mrf.mxu0  ;;  %v2163_v61 = vld [vmem:[#allocation2 + $0x38] sm:$0xff] }
 0x133   : > { %682 = vst.msk [vmem:[#allocation2 + $0x48] sm:$0xff] %vm334_vm0, %v665_v56  ;;  %v1567_v62 = vadd.f32 %v1566_v59, %v1565_v54  ;;  %v752_v0 = vadd.f32 %v1495_v52, %v2163_v61  ;;  %v366_v54 = vld [vmem:[#allocation2 + $0x78] sm:$0xff]  ;;  %v1020_v63 = vmul.f32 %v1495_v52, %v2163_v61 }
 0x134   : > { %v1568_v3 = vpop.f32.mrf.mxu0 }
 0x135   : > { %v666_v4 = vadd.f32 %v1567_v62, %v361_v57  ;;  %1641 = vmatmul.mubr.msk.f32.gmra.mxu1 %vm334_vm0, %v752_v0  ;;  %v1507_v0 = vunpack.c.h.bf16 %v1517_v38 }
 0x136   : > { %v1569_v7 = vpop.f32.mrf.mxu0  ;;  %v2171_v8 = vld [vmem:[#allocation2 + $0x40] sm:$0xff] }
 0x137   : > { %683 = vst.msk [vmem:[#allocation2 + $0x50] sm:$0xff] %vm334_vm0, %v666_v4  ;;  %v1570_v9 = vadd.f32 %v1569_v7, %v1568_v3  ;;  %v753_v10 = vadd.f32 %v1498_v2, %v2171_v8  ;;  %v1518_v3 = vld [vmem:[%s2078_s11 + $0x38] sm:$0xff]  }
 0x138   : > { %v1571_v13 = vpop.f32.mrf.mxu0 }
 0x139   : > { %v667_v15 = vadd.f32 %v1570_v9, %v362_v5  ;;  %1643 = vmatprep.mubr.msk.f32.mxu1 %vm334_vm0, %v753_v10  ;;  %v1510_v9 = vunpack.c.l.bf16 %v1518_v3 }
 0x13a   : > { %v1572_v19 = vpop.f32.mrf.mxu0  ;;  %v2182_v20 = vld [vmem:[#allocation2 + $0x48] sm:$0xff] }
 0x13b   : > { %684 = vst.msk [vmem:[#allocation2 + $0x58] sm:$0xff] %vm334_vm0, %v667_v15  ;;  %v1573_v21 = vadd.f32 %v1572_v19, %v1571_v13  ;;  %v754_v22 = vadd.f32 %v1499_v11, %v2182_v20  ;;  %v1511_v15 = vunpack.c.h.bf16 %v1518_v3 }
 0x13c   : > { %v1574_v25 = vpop.f32.mrf.mxu0 }
 0x13d   : > { %v668_v27 = vadd.f32 %v1573_v21, %v363_v17  ;;  %1644 = vmatmul.mubr.msk.f32.gmra.mxu1 %vm334_vm0, %v754_v22  ;;  %v1013_v21 = vmul.f32 %v1482_v53, %v2086_v58  ;;  %v1014_v22 = vmul.f32 %v1483_v60, %v2097_v1  ;;  %v1016_v53 = vmul.f32 %v1487_v16, %v2125_v23 }
 0x13e   : > { %v1575_v29 = vpop.f32.mrf.mxu0  ;;  %v739_v30 = vld [vmem:[#allocation2 + $0x50] sm:$0xff]  ;;  %v1017_v58 = vmul.f32 %v1490_v26, %v2133_v31  ;;  %v1019_v60 = vmul.f32 %v1494_v43, %v2152_v49  ;;  %v1021_v1 = vmul.f32 %v1498_v2, %v2171_v8 }
 0x13f   : > { %685 = vst.msk [vmem:[#allocation2 + $0x60] sm:$0xff] %vm334_vm0, %v668_v27  ;;  %v1576_v32 = vadd.f32 %v1575_v29, %v1574_v25  ;;  %v755_v33 = vadd.f32 %v1502_v24, %v739_v30  ;;  %v1015_v25 = vmul.f32 %v1486_v6, %v2108_v12  ;;  %v1022_v6 = vmul.f32 %v1499_v11, %v2182_v20 }
 0x140   : > { %v1577_v37 = vpop.f32.mrf.mxu0  ;;  %v1023_v12 = vmul.f32 %v1502_v24, %v739_v30  ;;  %v2267_v24 = vld [vmem:[%s2391_s3] ss:$0 sm:$0xff] }
 0x141   : > { %v669_v39 = vadd.f32 %v1576_v32, %v364_v28  ;;  %1646 = vmatprep.mubr.msk.f32.mxu1 %vm334_vm0, %v755_v33 }
 0x142   : > { %v1578_v42 = vpop.f32.mrf.mxu0  ;;  %v740_v44 = vld [vmem:[#allocation2 + $0x58] sm:$0xff] }
 0x143   : > { %686 = vst.msk [vmem:[#allocation2 + $0x68] sm:$0xff] %vm334_vm0, %v669_v39  ;;  %v1579_v45 = vadd.f32 %v1578_v42, %v1577_v37  ;;  %v756_v46 = vadd.f32 %v1503_v35, %v740_v44  ;;  %v1024_v16 = vmul.f32 %v1503_v35, %v740_v44  ;;  %v2282_v35 = vld [vmem:[%s2393_s5] ss:$0 sm:$0xff] }
 0x144   : > { %v1580_v50 = vpop.f32.mrf.mxu0 }
 0x145   : > { %v670_v51 = vadd.f32 %v1579_v45, %v365_v41  ;;  %1647 = vmatmul.mubr.msk.f32.gmra.mxu1 %vm334_vm0, %v756_v46 }
 0x146   : > { %v1581_v56 = vpop.f32.mrf.mxu0  ;;  %v741_v57 = vld [vmem:[#allocation2 + $0x60] sm:$0xff] }
 0x147   : > { %687 = vst.msk [vmem:[#allocation2 + $0x70] sm:$0xff] %vm334_vm0, %v670_v51  ;;  %v1582_v59 = vadd.f32 %v1581_v56, %v1580_v50  ;;  %v757_v62 = vadd.f32 %v1506_v47, %v741_v57  ;;  %v1025_v18 = vmul.f32 %v1506_v47, %v741_v57 }
 0x149   : > { %v671_v4 = vadd.f32 %v1582_v59, %v366_v54  ;;  %1649 = vmatprep.mubr.msk.f32.mxu1 %vm334_vm0, %v757_v62 }
 0x14a   : > { %v742_v5 = vld [vmem:[#allocation2 + $0x68] sm:$0xff] }
 0x14b   : > { %688 = vst.msk [vmem:[#allocation2 + $0x78] sm:$0xff] %vm334_vm0, %v671_v4  ;;  %v758_v7 = vadd.f32 %v1507_v0, %v742_v5  ;;  %v1026_v23 = vmul.f32 %v1507_v0, %v742_v5 }
 0x14d   : > { %1650 = vmatmul.mubr.msk.f32.gmra.mxu1 %vm334_vm0, %v758_v7 }
 0x14e   : > { %v743_v10 = vld [vmem:[#allocation2 + $0x70] sm:$0xff] }
 0x14f   : > { %v759_v13 = vadd.f32 %v1510_v9, %v743_v10  ;;  %v1027_v26 = vmul.f32 %v1510_v9, %v743_v10 }
 0x151   : > { %1652 = vmatprep.mubr.msk.f32.mxu1 %vm334_vm0, %v759_v13 }
 0x152   : > { %v744_v17 = vld [vmem:[#allocation2 + $0x78] sm:$0xff] }
 0x153   : > { %v760_v19 = vadd.f32 %v1511_v15, %v744_v17  ;;  %v1028_v31 = vmul.f32 %v1511_v15, %v744_v17 }
 0x155   : > { %1653 = vmatmul.mubr.msk.f32.gmra.mxu1 %vm334_vm0, %v760_v19 }
 0x156   : > { %1663 = vmatprep.mubr.msk.f32.mxu1 %vm334_vm0, %v1013_v21 }
 0x159   : > { %1664 = vmatmul.mubr.msk.f32.vlgmr.msra.gmra.mxu1 %vm334_vm0, %v1014_v22 }
 0x15a   : > { %1666 = vmatprep.mubr.msk.f32.mxu1 %vm334_vm0, %v1015_v25 }
 0x15d   : > { %1667 = vmatmul.mubr.msk.f32.gmra.mxu1 %vm334_vm0, %v1016_v53 }
 0x15e   : > { %1669 = vmatprep.mubr.msk.f32.mxu1 %vm334_vm0, %v1017_v58 }
 0x161   : > { %1670 = vmatmul.mubr.msk.f32.gmra.mxu1 %vm334_vm0, %v1018_v48 }
 0x162   : > { %1672 = vmatprep.mubr.msk.f32.mxu1 %vm334_vm0, %v1019_v60 }
 0x165   : > { %1673 = vmatmul.mubr.msk.f32.gmra.mxu1 %vm334_vm0, %v1020_v63 }
 0x166   : > { %1675 = vmatprep.mubr.msk.f32.mxu1 %vm334_vm0, %v1021_v1 }
 0x169   : > { %1676 = vmatmul.mubr.msk.f32.gmra.mxu1 %vm334_vm0, %v1022_v6 }
 0x16a   : > { %1678 = vmatprep.mubr.msk.f32.mxu1 %vm334_vm0, %v1023_v12 }
 0x16d   : > { %1679 = vmatmul.mubr.msk.f32.gmra.mxu1 %vm334_vm0, %v1024_v16 }
 0x16e   : > { %1681 = vmatprep.mubr.msk.f32.mxu1 %vm334_vm0, %v1025_v18 }
 0x171   : > { %1682 = vmatmul.mubr.msk.f32.gmra.mxu1 %vm334_vm0, %v1026_v23 }
 0x172   : > { %1684 = vmatprep.mubr.msk.f32.mxu1 %vm334_vm0, %v1027_v26 }
 0x175   : > { %1685 = vmatmul.mubr.msk.f32.gmra.mxu1 %vm334_vm0, %v1028_v31 }
 0x1dd   : > { %v1633_v34 = vpop.f32.mrf.mxu1 }
 0x1de   : > { %v892_v27 = vadd.f32 %v1633_v34, %v2267_v24 }
 0x1df   : > { %v886_v36 = vpop.f32.mrf.mxu1 }
 0x1e0   : > { %v887_v28 = vadd.f32 %v2267_v24, %v886_v36  ;;  %v982_v37 = vmul.f32 0.01, %v892_v27  ;;  %vm966_vm1 = vcmp.ge.f32.partialorder %v892_v27, 0.0 }
 0x1e2   : > { %v981_v38 = vmul.f32 0.01, %v887_v28  ;;  %vm965_vm2 = vcmp.ge.f32.partialorder %v887_v28, 0.0  ;;  %v998_v50 = vsel %vm966_vm1, %v892_v27, %v982_v37 }
 0x1e4   : > { %v997_v51 = vsel %vm965_vm2, %v887_v28, %v981_v38 }
 0x1e5   : > { %v1636_v40 = vpop.f32.mrf.mxu1 }
 0x1e6   : > { %v902_v29 = vadd.f32 %v1636_v40, %v2267_v24 }
 0x1e7   : > { %v896_v43 = vpop.f32.mrf.mxu1 }
 0x1e8   : > { %v897_v32 = vadd.f32 %v2267_v24, %v896_v43  ;;  %v984_v39 = vmul.f32 0.01, %v902_v29  ;;  %vm968_vm3 = vcmp.ge.f32.partialorder %v902_v29, 0.0 }
 0x1ea   : > { %v983_v42 = vmul.f32 0.01, %v897_v32  ;;  %vm967_vm4 = vcmp.ge.f32.partialorder %v897_v32, 0.0  ;;  %v1000_v54 = vsel %vm968_vm3, %v902_v29, %v984_v39 }
 0x1ec   : > { %v999_v59 = vsel %vm967_vm4, %v897_v32, %v983_v42 }
 0x1ed   : > { %v1639_v49 = vpop.f32.mrf.mxu1 }
 0x1ee   : > { %v912_v44 = vadd.f32 %v1639_v49, %v2267_v24 }
 0x1ef   : > { %v906_v52 = vpop.f32.mrf.mxu1 }
 0x1f0   : > { %v907_v45 = vadd.f32 %v2267_v24, %v906_v52  ;;  %vm970_vm6 = vcmp.ge.f32.partialorder %v912_v44, 0.0  ;;  %v986_v3 = vmul.f32 0.01, %v912_v44 }
 0x1f2   : > { %vm969_vm7 = vcmp.ge.f32.partialorder %v907_v45, 0.0  ;;  %v985_v13 = vmul.f32 0.01, %v907_v45  ;;  %v1002_v53 = vsel %vm970_vm6, %v912_v44, %v986_v3 }
 0x1f4   : > { %v1001_v12 = vsel %vm969_vm7, %v907_v45, %v985_v13 }
 0x1f5   : > { %v1642_v55 = vpop.f32.mrf.mxu1 }
 0x1f6   : > { %v922_v56 = vadd.f32 %v1642_v55, %v2267_v24 }
 0x1f7   : > { %v916_v61 = vpop.f32.mrf.mxu1 }
 0x1f8   : > { %v917_v4 = vadd.f32 %v2267_v24, %v916_v61  ;;  %vm972_vm9 = vcmp.ge.f32.partialorder %v922_v56, 0.0  ;;  %v988_v15 = vmul.f32 0.01, %v922_v56 }
 0x1fa   : > { %vm971_vm11 = vcmp.ge.f32.partialorder %v917_v4, 0.0  ;;  %v987_v58 = vmul.f32 0.01, %v917_v4  ;;  %v1004_v16 = vsel %vm972_vm9, %v922_v56, %v988_v15 }
 0x1fc   : > { %v1003_v40 = vsel %vm971_vm11, %v917_v4, %v987_v58 }
 0x1fd   : > { %v2253_v2 = vpop.f32.mrf.mxu1 }
 0x1fe   : > { %v932_v18 = vadd.f32 %v2253_v2, %v2267_v24 }
 0x1ff   : > { %v2255_v8 = vpop.f32.mrf.mxu1 }
 0x200   : > { %v927_v43 = vadd.f32 %v2267_v24, %v2255_v8  ;;  %vm974_vm15 = vcmp.ge.f32.partialorder %v932_v18, 0.0  ;;  %v990_v28 = vmul.f32 0.01, %v932_v18 }
 0x202   : > { %vm973_vm2 = vcmp.ge.f32.partialorder %v927_v43, 0.0  ;;  %v989_v39 = vmul.f32 0.01, %v927_v43 }
 0x205   : > { %v2257_v11 = vpop.f32.mrf.mxu1 }
 0x206   : > { %v942_v49 = vadd.f32 %v2257_v11, %v2267_v24 }
 0x207   : > { %v2259_v14 = vpop.f32.mrf.mxu1 }
 0x208   : > { %v937_v29 = vadd.f32 %v2267_v24, %v2259_v14  ;;  %vm976_vm3 = vcmp.ge.f32.partialorder %v942_v49, 0.0 }
 0x20d   : > { %v2261_v20 = vpop.f32.mrf.mxu1 }
 0x20e   : > { %v952_v3 = vadd.f32 %v2261_v20, %v2267_v24 }
 0x20f   : > { %v2272_v30 = vpop.f32.mrf.mxu1 }
 0x210   : > { %vm978_vm9 = vcmp.ge.f32.partialorder %v952_v3, 0.0 }
 0x215   : > { %v2275_v33 = vpop.f32.mrf.mxu1 }
 0x216   : > { %v962_v58 = vadd.f32 %v2275_v33, %v2267_v24 }
 0x217   : > { %v2284_v41 = vpop.f32.mrf.mxu1 }
 0x219   : > { %v1665_v46 = vpop.f32.mrf.mxu1 }
 0x21a   : > { %v1160_v47 = vadd.f32 %v1665_v46, %v2282_v35 }
 0x21b   : > { %v1154_v57 = vpop.f32.mrf.mxu1 }
 0x21c   : > { %vm1234_vm5 = vcmp.ge.f32.partialorder %v1160_v47, 0.0  ;;  %v1250_v62 = vmul.f32 0.01, %v1160_v47  ;;  %v1155_v0 = vadd.f32 %v2282_v35, %v1154_v57 }
 0x21d   : > { %v1668_v5 = vpop.f32.mrf.mxu1 }
 0x21e   : > { %v1266_v7 = vsel %vm1234_vm5, %v1160_v47, %v1250_v62  ;;  %vm1233_vm8 = vcmp.ge.f32.partialorder %v1155_v0, 0.0  ;;  %v1249_v9 = vmul.f32 0.01, %v1155_v0  ;;  %v1170_v10 = vadd.f32 %v1668_v5, %v2282_v35 }
 0x21f   : > { %v1282_v17 = vadd.f32 %v1266_v7, %v998_v50  ;;  %v1164_v19 = vpop.f32.mrf.mxu1  ;;  %v992_v47 = vmul.f32 0.01, %v942_v49  ;;  %vm975_vm5 = vcmp.ge.f32.partialorder %v937_v29, 0.0  ;;  %v991_v50 = vmul.f32 0.01, %v937_v29 }
 0x220   : > { %v1265_v21 = vsel %vm1233_vm8, %v1155_v0, %v1249_v9  ;;  %vm1236_vm10 = vcmp.ge.f32.partialorder %v1170_v10, 0.0  ;;  %v1252_v22 = vmul.f32 0.01, %v1170_v10  ;;  %v1165_v25 = vadd.f32 %v2282_v35, %v1164_v19 }
 0x221   : > { %1298 = vst.msk [vmem:[%s2296_s30 + $0x8] sm:$0xff] %vm334_vm0, %v1282_v17  ;;  %v1281_v48 = vadd.f32 %v1265_v21, %v997_v51  ;;  %v1671_v60 = vpop.f32.mrf.mxu1  ;;  %v1006_v62 = vsel %vm974_vm15, %v932_v18, %v990_v28  ;;  %v1005_v0 = vsel %vm973_vm2, %v927_v43, %v989_v39  ;;  %v1008_v13 = vsel %vm976_vm3, %v942_v49, %v992_v47 }
 0x222   : > { %v1268_v63 = vsel %vm1236_vm10, %v1170_v10, %v1252_v22  ;;  %vm1235_vm12 = vcmp.ge.f32.partialorder %v1165_v25, 0.0  ;;  %v1251_v1 = vmul.f32 0.01, %v1165_v25  ;;  %v1180_v6 = vadd.f32 %v1671_v60, %v2282_v35 }
 0x223   : > { %1297 = vst.msk [vmem:[%s2296_s30] sm:$0xff] %vm334_vm0, %v1281_v48  ;;  %v1284_v23 = vadd.f32 %v1268_v63, %v1000_v54  ;;  %v1174_v26 = vpop.f32.mrf.mxu1  ;;  %v1007_v15 = vsel %vm975_vm5, %v937_v29, %v991_v50  ;;  %v947_v17 = vadd.f32 %v2267_v24, %v2272_v30 }
 0x224   : > { %v1267_v31 = vsel %vm1235_vm12, %v1165_v25, %v1251_v1  ;;  %vm1238_vm13 = vcmp.ge.f32.partialorder %v1180_v6, 0.0  ;;  %v1254_v34 = vmul.f32 0.01, %v1180_v6  ;;  %v1175_v36 = vadd.f32 %v2282_v35, %v1174_v26 }
 0x225   : > { %1300 = vst.msk [vmem:[%s2296_s30 + $0x18] sm:$0xff] %vm334_vm0, %v1284_v23  ;;  %v1283_v52 = vadd.f32 %v1267_v31, %v999_v59  ;;  %v1674_v55 = vpop.f32.mrf.mxu1  ;;  %vm977_vm11 = vcmp.ge.f32.partialorder %v947_v17, 0.0 }
 0x226   : > { %v1270_v61 = vsel %vm1238_vm13, %v1180_v6, %v1254_v34  ;;  %vm1237_vm14 = vcmp.ge.f32.partialorder %v1175_v36, 0.0  ;;  %v1253_v2 = vmul.f32 0.01, %v1175_v36  ;;  %v1190_v27 = vadd.f32 %v1674_v55, %v2282_v35 }
 0x227   : > { %1299 = vst.msk [vmem:[%s2296_s30 + $0x10] sm:$0xff] %vm334_vm0, %v1283_v52  ;;  %v1286_v8 = vadd.f32 %v1270_v61, %v1002_v53  ;;  %v1184_v32 = vpop.f32.mrf.mxu1  ;;  %v994_v53 = vmul.f32 0.01, %v952_v3  ;;  %v993_v6 = vmul.f32 0.01, %v947_v17 }
 0x228   : > { %v1269_v11 = vsel %vm1237_vm14, %v1175_v36, %v1253_v2  ;;  %vm1240_vm1 = vcmp.ge.f32.partialorder %v1190_v27, 0.0  ;;  %v1256_v37 = vmul.f32 0.01, %v1190_v27  ;;  %v1185_v38 = vadd.f32 %v2282_v35, %v1184_v32 }
 0x229   : > { %1302 = vst.msk [vmem:[%s2296_s30 + $0x28] sm:$0xff] %vm334_vm0, %v1286_v8  ;;  %v1285_v42 = vadd.f32 %v1269_v11, %v1001_v12  ;;  %v1677_v44 = vpop.f32.mrf.mxu1  ;;  %v957_v12 = vadd.f32 %v2267_v24, %v2284_v41  ;;  %v1010_v31 = vsel %vm978_vm9, %v952_v3, %v994_v53  ;;  %v996_v34 = vmul.f32 0.01, %v962_v58 }
 0x22a   : > { %v1272_v45 = vsel %vm1240_vm1, %v1190_v27, %v1256_v37  ;;  %vm1239_vm4 = vcmp.ge.f32.partialorder %v1185_v38, 0.0  ;;  %v1255_v14 = vmul.f32 0.01, %v1185_v38  ;;  %v1200_v46 = vadd.f32 %v1677_v44, %v2282_v35 }
 0x22b   : > { %1301 = vst.msk [vmem:[%s2296_s30 + $0x20] sm:$0xff] %vm334_vm0, %v1285_v42  ;;  %v1288_v51 = vadd.f32 %v1272_v45, %v1004_v16  ;;  %v1194_v54 = vpop.f32.mrf.mxu1  ;;  %v1009_v49 = vsel %vm977_vm11, %v947_v17, %v993_v6  ;;  %vm980_vm14 = vcmp.ge.f32.partialorder %v962_v58, 0.0  ;;  %v995_v52 = vmul.f32 0.01, %v957_v12 }
 0x22c   : > { %v1271_v56 = vsel %vm1239_vm4, %v1185_v38, %v1255_v14  ;;  %vm1242_vm6 = vcmp.ge.f32.partialorder %v1200_v46, 0.0  ;;  %v1258_v57 = vmul.f32 0.01, %v1200_v46  ;;  %v1195_v59 = vadd.f32 %v2282_v35, %v1194_v54 }
 0x22d   : > { %1304 = vst.msk [vmem:[%s2296_s30 + $0x38] sm:$0xff] %vm334_vm0, %v1288_v51  ;;  %v1287_v4 = vadd.f32 %v1271_v56, %v1003_v40  ;;  %v1680_v5 = vpop.f32.mrf.mxu1  ;;  %vm979_vm1 = vcmp.ge.f32.partialorder %v957_v12, 0.0  ;;  %v1012_v8 = vsel %vm980_vm14, %v962_v58, %v996_v34 }
 0x22e   : > { %v1274_v7 = vsel %vm1242_vm6, %v1200_v46, %v1258_v57  ;;  %vm1241_vm7 = vcmp.ge.f32.partialorder %v1195_v59, 0.0  ;;  %v1257_v9 = vmul.f32 0.01, %v1195_v59  ;;  %v1210_v10 = vadd.f32 %v1680_v5, %v2282_v35 }
 0x22f   : > { %1303 = vst.msk [vmem:[%s2296_s30 + $0x30] sm:$0xff] %vm334_vm0, %v1287_v4  ;;  %v1290_v20 = vadd.f32 %v1274_v7, %v1006_v62  ;;  %v1204_v19 = vpop.f32.mrf.mxu1  ;;  %v1011_v38 = vsel %vm979_vm1, %v957_v12, %v995_v52 }
 0x230   : > { %v1273_v21 = vsel %vm1241_vm7, %v1195_v59, %v1257_v9  ;;  %vm1244_vm8 = vcmp.ge.f32.partialorder %v1210_v10, 0.0  ;;  %v1260_v22 = vmul.f32 0.01, %v1210_v10  ;;  %v1205_v25 = vadd.f32 %v2282_v35, %v1204_v19 }
 0x231   : > { %1306 = vst.msk [vmem:[%s2296_s30 + $0x48] sm:$0xff] %vm334_vm0, %v1290_v20  ;;  %v1289_v48 = vadd.f32 %v1273_v21, %v1005_v0  ;;  %v1683_v60 = vpop.f32.mrf.mxu1 }
 0x232   : > { %v1276_v30 = vsel %vm1244_vm8, %v1210_v10, %v1260_v22  ;;  %vm1243_vm10 = vcmp.ge.f32.partialorder %v1205_v25, 0.0  ;;  %v1259_v63 = vmul.f32 0.01, %v1205_v25  ;;  %v1220_v1 = vadd.f32 %v1683_v60, %v2282_v35 }
 0x233   : > { %1305 = vst.msk [vmem:[%s2296_s30 + $0x40] sm:$0xff] %vm334_vm0, %v1289_v48  ;;  %v1292_v16 = vadd.f32 %v1276_v30, %v1008_v13  ;;  %v1214_v18 = vpop.f32.mrf.mxu1 }
 0x234   : > { %v1275_v33 = vsel %vm1243_vm10, %v1205_v25, %v1259_v63  ;;  %vm1246_vm12 = vcmp.ge.f32.partialorder %v1220_v1, 0.0  ;;  %v1262_v23 = vmul.f32 0.01, %v1220_v1  ;;  %v1215_v26 = vadd.f32 %v2282_v35, %v1214_v18 }
 0x235   : > { %1308 = vst.msk [vmem:[%s2296_s30 + $0x58] sm:$0xff] %vm334_vm0, %v1292_v16  ;;  %v1291_v36 = vadd.f32 %v1275_v33, %v1007_v15  ;;  %v1686_v40 = vpop.f32.mrf.mxu1 }
 0x236   : > { %v1278_v43 = vsel %vm1246_vm12, %v1220_v1, %v1262_v23  ;;  %vm1245_vm13 = vcmp.ge.f32.partialorder %v1215_v26, 0.0  ;;  %v1261_v24 = vmul.f32 0.01, %v1215_v26  ;;  %v1230_v41 = vadd.f32 %v1686_v40, %v2282_v35 }
 0x237   : > { %1307 = vst.msk [vmem:[%s2296_s30 + $0x50] sm:$0xff] %vm334_vm0, %v1291_v36  ;;  %v1294_v55 = vadd.f32 %v1278_v43, %v1010_v31  ;;  %v1224_v61 = vpop.f32.mrf.mxu1 }
 0x238   : > { %v1277_v2 = vsel %vm1245_vm13, %v1215_v26, %v1261_v24  ;;  %vm1248_vm15 = vcmp.ge.f32.partialorder %v1230_v41, 0.0  ;;  %v1264_v27 = vmul.f32 0.01, %v1230_v41  ;;  %v1225_v28 = vadd.f32 %v2282_v35, %v1224_v61 }
 0x239   : > { %1310 = vst.msk [vmem:[%s2296_s30 + $0x68] sm:$0xff] %vm334_vm0, %v1294_v55  ;;  %v1293_v29 = vadd.f32 %v1277_v2, %v1009_v49 }
 0x23a   : > { %v1280_v32 = vsel %vm1248_vm15, %v1230_v41, %v1264_v27  ;;  %vm1247_vm2 = vcmp.ge.f32.partialorder %v1225_v28, 0.0  ;;  %v1263_v11 = vmul.f32 0.01, %v1225_v28 }
 0x23b   : > { %1309 = vst.msk [vmem:[%s2296_s30 + $0x60] sm:$0xff] %vm334_vm0, %v1293_v29  ;;  %v1296_v37 = vadd.f32 %v1280_v32, %v1012_v8 }
 0x23c   : > { %v1279_v39 = vsel %vm1247_vm2, %v1225_v28, %v1263_v11 }
 0x23d   : > { %1312 = vst.msk [vmem:[%s2296_s30 + $0x78] sm:$0xff] %vm334_vm0, %v1296_v37  ;;  %v1295_v42 = vadd.f32 %v1279_v39, %v1011_v38 }
 0x23f   : > { %1311 = vst.msk [vmem:[%s2296_s30 + $0x70] sm:$0xff] %vm334_vm0, %v1295_v42 }
 0x240 PF: > { %s19_s26 = sadd.s32 1, %s1863_s26   ;;  %s2398_s21 = smov %s1847_s22 }
 0x241   : > { %p16_p8 = scmp.ge.s32.totalorder %s19_s26, 4   ;;  %s2399_s22 = smov %s1851_s23 }
 0x242   : > { %s2400_s23 = smov %s1953_s9  ;;  %s2401_s24 = smov %s1859_s25 }
 0x243   : > { %s2402_s25 = smov %s2404_s28  ;;  %18 = sbr.rel (!%p16_p8) target bundleno = 4 (0x4), region = 94 }
 0x248   :  { %1335 = vsyncpa [#allocation4], 1 }
 0x249   :  { %1337 = vsyncpa [#allocation4 + $0x1], 1 }

</bundles_post_ra>
